<compile_context>
chip_gen: v7x
topology: tpu7x:2x2x1
jax: 0.10.0
libtpu: 0.0.40
codegen_flags: <defaults>
</compile_context>

<pallas_src>
import jax
import jax.numpy as jnp
from jax.experimental import pallas as pl
from jax.experimental.pallas import tpu as pltpu


def _round_up(x, m):
    return ((x + m - 1) // m) * m


def gate_wln_kernel(img_ref, txt_ref, w_img_ref, w_txt_ref, out_ref):
    dim_p = out_ref.shape[-1]
    img = img_ref[...]
    txt = txt_ref[...]

    # Weights are pre-transposed to [in, out] in the wrapper -> plain x @ W MXU
    # contraction (no in-kernel weight relayout). f32 accumulation on the MXU.
    y_img = jnp.dot(img, w_img_ref[...], preferred_element_type=jnp.float32)
    y_txt = jnp.dot(txt, w_txt_ref[...], preferred_element_type=jnp.float32)

    # First dim_p output columns = trans1/trans2, last dim_p = gate logits.
    i_emb = jnp.tanh(y_img[:, :dim_p])
    t_emb = jnp.tanh(y_txt[:, :dim_p])

    # sigmoid(s) == 0.5*(1 + tanh(0.5*s)): one EUP op instead of exp + recip.
    s = y_img[:, dim_p:] + y_txt[:, dim_p:]
    z = 0.5 * (1.0 + jnp.tanh(0.5 * s))

    # z*i + (1-z)*t == t + z*(i - t)  (saves a mul and the (1-z) temp)
    out_ref[...] = (t_emb + z * (i_emb - t_emb)).astype(out_ref.dtype)


def _vmem_capacity_bytes():
    try:
        return int(pltpu.get_tpu_info().vmem_capacity_bytes)
    except Exception:
        return 64 << 20  # conservative fallback (v7x per-TensorCore)


def pack_gate_wln_weights(w1, w2, w_all, *, compute_dtype=jnp.bfloat16):
    """Pack PyTorch-layout weights into two [in, out] = (dim_p, 2*dim_p) slabs.

    Call ONCE at init and reuse: the pad/transpose/concat/cast is hoisted out of
    the per-forward path so ~16*dim^2 bytes of weight repack HBM traffic is not
    re-paid on every call.

      w1, w2:  [dim, dim]    (PyTorch nn.Linear weight, [out, in])
      w_all:   [dim, 2*dim]  (PyTorch nn.Linear weight, [out, in])
    Returned slabs:
      w_img = [ w1.T | w_all[:, :dim].T ]   -> (dim_p, 2*dim_p)
      w_txt = [ w2.T | w_all[:, dim:].T ]   -> (dim_p, 2*dim_p)
    """
    dim = w1.shape[0]
    assert w1.shape == (dim, dim) and w2.shape == (dim, dim)
    assert w_all.shape == (dim, 2 * dim)
    dim_p = _round_up(dim, 128)

    def pad2(x):
        return jnp.pad(x, ((0, dim_p - x.shape[0]), (0, dim_p - x.shape[1])))

    w_img = jnp.concatenate([pad2(w1.T), pad2(w_all[:, :dim].T)], axis=1)
    w_txt = jnp.concatenate([pad2(w2.T), pad2(w_all[:, dim:].T)], axis=1)
    if compute_dtype is not None:
        w_img = w_img.astype(compute_dtype)
        w_txt = w_txt.astype(compute_dtype)
    return w_img, w_txt


def gate_wln_packed(image_emb, text_emb, w_img, w_txt, *, dim,
                    block_b=None, compute_dtype=jnp.bfloat16, act_buffers=2):
    """GatewLn forward with pre-packed weights (see pack_gate_wln_weights)."""
    B, in_dim = image_emb.shape
    assert in_dim == dim and text_emb.shape == (B, dim)
    dim_p = _round_up(dim, 128)
    assert w_img.shape == (dim_p, 2 * dim_p) and w_txt.shape == (dim_p, 2 * dim_p)

    out_dtype = image_emb.dtype
    act_dtype = w_img.dtype if compute_dtype is None else jnp.dtype(compute_dtype)
    itemsize = jnp.dtype(act_dtype).itemsize
    out_itemsize = jnp.dtype(out_dtype).itemsize
    vmem_cap = _vmem_capacity_bytes()

    # ---- batch tile: target ~2 MiB per activation tile (HBM roofline), capped
    # by the batch and the VMEM budget; ensure >=2 grid steps when possible so
    # the "parallel" batch axis can shard across v7x's two TensorCores.
    b8 = _round_up(B, 8)
    if block_b is None:
        tb = max(_round_up((2 << 20) // max(dim_p * itemsize, 1), 8), 8)
    else:
        tb = _round_up(max(block_b, 8), 8)
    tb = min(tb, b8)
    if tb >= b8 and b8 >= 16:
        tb = _round_up(-(-b8 // 2), 8)

    def vmem_need(tb_):
        w_bytes = 2 * dim_p * (2 * dim_p) * itemsize           # single-buffered slabs
        act_in = 2 * act_buffers * tb_ * dim_p * itemsize      # img + txt tiles
        act_out = 2 * tb_ * dim_p * out_itemsize               # double-buffered out
        epilogue = 2 * tb_ * (2 * dim_p) * 4 + 4 * tb_ * dim_p * 4  # f32 y/i/t/z temps
        return w_bytes + act_in + act_out + epilogue + (2 << 20)    # + headroom

    while tb > 8 and vmem_need(tb) > vmem_cap:
        tb = _round_up(tb // 2, 8)

    b_p = _round_up(B, tb)
    grid = (b_p // tb,)
    vmem_limit = int(min(max(vmem_need(tb), 32 << 20), vmem_cap))

    def pad_act(x):
        x = jnp.pad(x, ((0, b_p - B), (0, dim_p - dim)))
        return x.astype(act_dtype) if x.dtype != act_dtype else x

    img_p = pad_act(image_emb)
    txt_p = pad_act(text_emb)
    if w_img.dtype != act_dtype:
        w_img = w_img.astype(act_dtype)
        w_txt = w_txt.astype(act_dtype)

    act_in_spec = pl.BlockSpec((tb, dim_p), lambda i: (i, 0),
                               pipeline_mode=pl.Buffered(act_buffers))
    out_spec = pl.BlockSpec((tb, dim_p), lambda i: (i, 0))
    # Grid-invariant weight slabs: fetched once, single-buffered in VMEM.
    w_spec = pl.BlockSpec((dim_p, 2 * dim_p), lambda i: (0, 0),
                          pipeline_mode=pl.Buffered(1))

    out_p = pl.pallas_call(
        gate_wln_kernel,
        out_shape=jax.ShapeDtypeStruct((b_p, dim_p), out_dtype),
        grid=grid,
        in_specs=[act_in_spec, act_in_spec, w_spec, w_spec],
        out_specs=out_spec,
        compiler_params=pltpu.CompilerParams(
            dimension_semantics=("parallel",),   # v7x: shard batch over 2 TCs
            vmem_limit_bytes=vmem_limit,         # clamped to real per-core VMEM
        ),
    )(img_p, txt_p, w_img, w_txt)

    return out_p[:B, :dim]


def gate_wln(image_emb, text_emb, w1, w2, w_all, *, block_b=None,
             compute_dtype=jnp.bfloat16, act_buffers=2):
    """Convenience wrapper: packs weights then calls the packed kernel.

    For repeated forwards, call pack_gate_wln_weights once and use
    gate_wln_packed directly to avoid re-packing weights per call.
    """
    dim = w1.shape[0]
    w_img, w_txt = pack_gate_wln_weights(w1, w2, w_all, compute_dtype=compute_dtype)
    return gate_wln_packed(image_emb, text_emb, w_img, w_txt, dim=dim,
                           block_b=block_b, compute_dtype=compute_dtype,
                           act_buffers=act_buffers)


def gate_wln_ref(image_emb, text_emb, w1, w2, w_all):
    """Pure-JAX reference matching the PyTorch forward exactly."""
    whole = jnp.concatenate([image_emb, text_emb], axis=1)
    z = jax.nn.sigmoid(whole @ w_all.T)
    i_emb = jnp.tanh(image_emb @ w1.T)
    t_emb = jnp.tanh(text_emb @ w2.T)
    return z * i_emb + (1 - z) * t_emb


if __name__ == "__main__":
    B, dim = 24, 32
    key = jax.random.PRNGKey(0)
    k_img, k_txt, k_w1, k_w2, k_wa = jax.random.split(key, 5)

    image_emb = jax.random.normal(k_img, (B, dim), dtype=jnp.float32)
    text_emb = jax.random.normal(k_txt, (B, dim), dtype=jnp.float32)

    # Xavier-normal init: std = sqrt(2 / (fan_in + fan_out))
    std_sq = (2.0 / (dim + dim)) ** 0.5
    std_all = (2.0 / (2 * dim + dim)) ** 0.5
    w1 = std_sq * jax.random.normal(k_w1, (dim, dim), dtype=jnp.float32)
    w2 = std_sq * jax.random.normal(k_w2, (dim, dim), dtype=jnp.float32)
    w_all = std_all * jax.random.normal(k_wa, (dim, 2 * dim), dtype=jnp.float32)

    ref = gate_wln_ref(image_emb, text_emb, w1, w2, w_all)

    # 1) f32 compute, explicit small tile: multi-step grid (grid=(3,)), resident
    #    single-buffered weights, dim->128 lane padding; tight tolerance.
    out_f32 = gate_wln(image_emb, text_emb, w1, w2, w_all,
                       block_b=8, compute_dtype=jnp.float32)
    out_f32 = jax.block_until_ready(out_f32)
    assert out_f32.shape == (B, dim)
    assert jnp.allclose(out_f32, ref, atol=1e-5, rtol=1e-5)

    # 2) Default bf16-compute path (recommended on v6e/v7x): weights packed once
    #    at "init", auto batch tile (split into 2 grid steps for megacore).
    #    bf16 inputs / f32 accumulation => looser tolerance vs the f32 reference.
    w_img_p, w_txt_p = pack_gate_wln_weights(w1, w2, w_all)
    out_bf16 = gate_wln_packed(image_emb, text_emb, w_img_p, w_txt_p, dim=dim)
    out_bf16 = jax.block_until_ready(out_bf16)
    assert out_bf16.shape == (B, dim)
    assert jnp.allclose(out_bf16, ref, atol=3e-2, rtol=3e-2)

    print("KERNEL_OK")
</pallas_src>

<mosaic_0001>
module attributes {stable_mosaic.version = 11 : i64} {
  func.func @gate_wln_kernel(%arg0: i32, %arg1: memref<8x128xf32, #tpu.memory_space<vmem>>, %arg2: memref<8x128xf32, #tpu.memory_space<vmem>>, %arg3: memref<128x256xf32, #tpu.memory_space<vmem>>, %arg4: memref<128x256xf32, #tpu.memory_space<vmem>>, %arg5: memref<8x128xf32, #tpu.memory_space<vmem>>) attributes {dimension_semantics = [#tpu.dimension_semantics<parallel>], iteration_bounds = array<i64: 3>, scalar_prefetch = 0 : i64, scratch_operands = 0 : i64, tpu.core_type = #tpu.core_type<tc>, window_params = [{pipeline_mode = #tpu.pipeline_mode<double_buffered>, transform_indices = @transform_0, window_bounds = array<i64: 8, 128>}, {pipeline_mode = #tpu.pipeline_mode<double_buffered>, transform_indices = @transform_1, window_bounds = array<i64: 8, 128>}, {pipeline_mode = #tpu.pipeline_mode<synchronous>, transform_indices = @transform_2, window_bounds = array<i64: 128, 256>}, {pipeline_mode = #tpu.pipeline_mode<synchronous>, transform_indices = @transform_3, window_bounds = array<i64: 128, 256>}, {transform_indices = @transform_4, window_bounds = array<i64: 8, 128>}]} {
    %c0 = arith.constant 0 : index
    %c0_0 = arith.constant 0 : index
    %0 = vector.load %arg1[%c0, %c0_0] : memref<8x128xf32, #tpu.memory_space<vmem>>, vector<8x128xf32>
    %c0_1 = arith.constant 0 : index
    %c0_2 = arith.constant 0 : index
    %1 = vector.load %arg2[%c0_1, %c0_2] : memref<8x128xf32, #tpu.memory_space<vmem>>, vector<8x128xf32>
    %c0_3 = arith.constant 0 : index
    %c0_4 = arith.constant 0 : index
    %2 = vector.load %arg3[%c0_3, %c0_4] : memref<128x256xf32, #tpu.memory_space<vmem>>, vector<128x256xf32>
    %cst = arith.constant dense<0.000000e+00> : vector<8x256xf32>
    %3 = tpu.matmul %0, %2, %cst {dimension_numbers = #tpu.dot_dimension_numbers<[1], [0], [0], [1], [0, 0, 1, 1], [], []>} : vector<8x128xf32>, vector<128x256xf32>, vector<8x256xf32> -> vector<8x256xf32>
    %c0_5 = arith.constant 0 : index
    %c0_6 = arith.constant 0 : index
    %4 = vector.load %arg4[%c0_5, %c0_6] : memref<128x256xf32, #tpu.memory_space<vmem>>, vector<128x256xf32>
    %cst_7 = arith.constant dense<0.000000e+00> : vector<8x256xf32>
    %5 = tpu.matmul %1, %4, %cst_7 {dimension_numbers = #tpu.dot_dimension_numbers<[1], [0], [0], [1], [0, 0, 1, 1], [], []>} : vector<8x128xf32>, vector<128x256xf32>, vector<8x256xf32> -> vector<8x256xf32>
    %6 = vector.extract_strided_slice %3 {offsets = [0, 0], sizes = [8, 128], strides = [1, 1]} : vector<8x256xf32> to vector<8x128xf32>
    %7 = math.tanh %6 : vector<8x128xf32>
    %8 = vector.extract_strided_slice %5 {offsets = [0, 0], sizes = [8, 128], strides = [1, 1]} : vector<8x256xf32> to vector<8x128xf32>
    %9 = math.tanh %8 : vector<8x128xf32>
    %10 = vector.extract_strided_slice %3 {offsets = [0, 128], sizes = [8, 128], strides = [1, 1]} : vector<8x256xf32> to vector<8x128xf32>
    %11 = vector.extract_strided_slice %5 {offsets = [0, 128], sizes = [8, 128], strides = [1, 1]} : vector<8x256xf32> to vector<8x128xf32>
    %12 = arith.addf %10, %11 : vector<8x128xf32>
    %cst_8 = arith.constant 5.000000e-01 : f32
    %13 = vector.broadcast %cst_8 : f32 to vector<8x128xf32>
    %14 = arith.mulf %13, %12 : vector<8x128xf32>
    %15 = math.tanh %14 : vector<8x128xf32>
    %cst_9 = arith.constant 1.000000e+00 : f32
    %16 = vector.broadcast %cst_9 : f32 to vector<8x128xf32>
    %17 = arith.addf %16, %15 : vector<8x128xf32>
    %cst_10 = arith.constant 5.000000e-01 : f32
    %18 = vector.broadcast %cst_10 : f32 to vector<8x128xf32>
    %19 = arith.mulf %18, %17 : vector<8x128xf32>
    %20 = arith.subf %7, %9 : vector<8x128xf32>
    %21 = arith.mulf %19, %20 : vector<8x128xf32>
    %22 = arith.addf %9, %21 : vector<8x128xf32>
    %c0_11 = arith.constant 0 : index
    %c0_12 = arith.constant 0 : index
    %23 = vector.load %arg5[%c0_11, %c0_12] : memref<8x128xf32, #tpu.memory_space<vmem>>, vector<8x128xf32>
    tpu.vector_store %arg5[%c0_11, %c0_12], %22 {strides = array<i32>} : memref<8x128xf32, #tpu.memory_space<vmem>>, vector<8x128xf32>,
    return
  }
  func.func @transform_0(%arg0: i32) -> (i32, i32) {
    %c0_i32 = arith.constant 0 : i32
    %c0_i32_0 = arith.constant 0 : i32
    return %arg0, %c0_i32 : i32, i32
  }
  func.func @transform_1(%arg0: i32) -> (i32, i32) {
    %c0_i32 = arith.constant 0 : i32
    %c0_i32_0 = arith.constant 0 : i32
    return %arg0, %c0_i32 : i32, i32
  }
  func.func @transform_2(%arg0: i32) -> (i32, i32) {
    %c0_i32 = arith.constant 0 : i32
    %c0_i32_0 = arith.constant 0 : i32
    %c0_i32_1 = arith.constant 0 : i32
    return %c0_i32, %c0_i32_0 : i32, i32
  }
  func.func @transform_3(%arg0: i32) -> (i32, i32) {
    %c0_i32 = arith.constant 0 : i32
    %c0_i32_0 = arith.constant 0 : i32
    %c0_i32_1 = arith.constant 0 : i32
    return %c0_i32, %c0_i32_0 : i32, i32
  }
  func.func @transform_4(%arg0: i32) -> (i32, i32) {
    %c0_i32 = arith.constant 0 : i32
    %c0_i32_0 = arith.constant 0 : i32
    return %arg0, %c0_i32 : i32, i32
  }
}

</mosaic_0001>

<bundles_post_ra>
// kernel: tpu_custom_call.1
= control target key start
LH: loop header
LB: loop body
LE: loop exit
PB: predicated region body
PF: predicated region fallthrough
CT: control target
= control target key end

     0   :  { %s1286_s0 = inlined_call_operand.hbm [shape: f32[24,128], index: 0, kind: input, shape index: {}]   ;;  %s1287_s1 = inlined_call_operand.hbm [shape: f32[24,128], index: 1, kind: input, shape index: {}]   ;;  %s1288_s2 = inlined_call_operand.hbm [shape: f32[128,256], index: 2, kind: input, shape index: {}]   ;;  %s1289_s3 = inlined_call_operand.hbm [shape: f32[128,256], index: 3, kind: input, shape index: {}]   ;;  %s1290_s4 = inlined_call_operand.hbm [shape: f32[24,128], index: 4, kind: output, shape index: {}]  }
   0x1   :  { %1295 = sst [smem:[#allocation16_spill]] %s1288_s2 }
   0x2   :  { %9 = vsyncpa [#allocation3], 0 }
   0x3   :  { %11 = vsyncpa [#allocation3 + $0x1], 0 }
   0x4   :  { %12 = vsyncpa [#allocation6], 0 }
   0x5   :  { %14 = vsyncpa [#allocation6 + $0x1], 0 }
   0x6   :  { %15 = vsyncpa [#allocation9], 0 }
   0x7   :  { %16 = vsyncpa [#allocation4], 0 }
   0x8   :  { %18 = vsyncpa [#allocation4 + $0x1], 0  ;;  %s1017_s15 = smov 0   ;;  %s1019_s16 = smov 0  }
   0x9   :  { %s1021_s17 = smov 0   ;;  %s1023_s18 = smov 0  }
   0xa LB: > { %s1038_s19 = sadd.s32 4294967295, %s982_s18   ;;  %s624_s20 = sadd.s32 4294967294, %s982_s18   ;;  %s982_s18 = sphi %s1023_s18, %s1315_s18   ;;  %s978_s17 = sphi %s1021_s17, %s1314_s17   ;;  %s974_s16 = sphi %s1019_s16, %s1313_s16   ;;  %s970_s15 = sphi %s1017_s15, %s1312_s15  }
   0xb   : > { %p44_p0 = scmp.ne.s32.totalorder %s974_s16, %s970_s15  ;;  %p1291_p1 = scmp.eq.s32.totalorder %s1038_s19, 0 }
   0xc   : > { %p142_p3 = scmp.eq.s32.totalorder %s624_s20, 2  ;;  %p625_p5 = scmp.ge.s32.totalorder %s982_s18, 1 }
   0xd   : > { %p1047_p4 = por %p1291_p1, %p44_p0  ;;  %p149_p7 = scmp.lt.s32.totalorder %s982_s18, 4 }
   0xe   : > { %p1052_p6 = por %p142_p3, %p44_p0  ;;  %s984_s24 = smov [#allocation7]  }
   0xf   : > { %s1296_s21 = scalar_select %p1047_p4, 1, 0 }
  0x10   : > { %s1297_s22 = scalar_select %p1052_p6, 1, 0 }
  0x11   : > { %p1057_p8 = pnand %p625_p5, %p149_p7  ;;  %s161_s25 = sshll.u32 %s984_s24, 4  ;;  %s162_s25 = int_to_ptr.vmem [resolvable:$true] %s161_s25 }
  0x12   : > { %s985_s27 = smov [#allocation8]   ;;  %s1300_s2 = sld [smem:[#allocation16_spill]] }
  0x13   : > { %s1298_s23 = scalar_select %p1057_p8, 1, 0 }
  0x14   : > { %p721_p9 = pneg %p1057_p8  ;;  %s174_s28 = sshll.u32 %s985_s27, 4  ;;  %s1069_s28 = int_to_ptr.vmem [resolvable:$true] %s174_s28 }
  0x16   : > { %p1065_p10 = pnand %p721_p9, %p1291_p1 }
  0x18   : > { %s788_s5 = scalar_lea.hbm %s1300_s2, 4096  ;;  %p790_p12 = pneg %p1065_p10 }
  0x19   : > { %p789_p11 = scmp.ne.s32.totalorder %s1300_s2, %s788_s5  ;;  %p795_p3 = scmp.lt.u32.totalorder %s788_s5, %s1300_s2 }
  0x1b   : > { %p791_p13 = pnand %p790_p12, %p789_p11 }
  0x1d   : > { %p792_p0 = pneg %p791_p13 }
  0x1f   : > { %p797_p5 = pnand %p795_p3, %p792_p0 }
  0x21   : > { %800 = shalt.err (!%p797_p5)
}
  0x22   : > { %s801_s10 = scalar_lea.vmem %s162_s25, 4096  ;;  %p809_p2 = scmp.lt.s32.totalorder %s162_s25, %s162_s25 }
  0x23   : > { %p802_p7 = scmp.ne.s32.totalorder %s162_s25, %s801_s10  ;;  %p810_p6 = scmp.lt.s32.totalorder %s801_s10, %s801_s10 }
  0x25   : > { %p804_p9 = pnand %p802_p7, %p790_p12  ;;  %p811_p4 = por %p810_p6, %p809_p2 }
  0x27   : > { %p805_p1 = pneg %p804_p9 }
  0x29   : > { %p812_p8 = pnand %p811_p4, %p805_p1 }
  0x2b   : > { %815 = shalt.err (!%p812_p8)
}
  0x2c   : > { %s986_s11 = smov 256   ;;  %s987_s12 = smov 16  }
  0x2d   : > { %724 = dma.hbm_to_vmem [thread:$0]  (!%p1065_p10), %s1300_s2, 4096, %s162_s25, [#allocation6], %s986_s11, %s986_s11, %s987_s12  }
  0x2e   : > { %s816_s27 = scalar_lea.hbm %s1289_s3, 4096 }
  0x2f   : > { %p817_p11 = scmp.ne.s32.totalorder %s1289_s3, %s816_s27  ;;  %p823_p4 = scmp.lt.u32.totalorder %s816_s27, %s1289_s3 }
  0x31   : > { %p819_p1 = pnand %p817_p11, %p790_p12 }
  0x33   : > { %p820_p2 = pneg %p819_p1 }
  0x35   : > { %p825_p6 = pnand %p823_p4, %p820_p2 }
  0x37   : > { %828 = shalt.err (!%p825_p6)
}
  0x38   : > { %s829_s25 = scalar_lea.vmem %s1069_s28, 4096  ;;  %p837_p3 = scmp.lt.s32.totalorder %s1069_s28, %s1069_s28 }
  0x39   : > { %p830_p8 = scmp.ne.s32.totalorder %s1069_s28, %s829_s25  ;;  %p838_p5 = scmp.lt.s32.totalorder %s829_s25, %s829_s25 }
  0x3b   : > { %p832_p13 = pnand %p830_p8, %p790_p12  ;;  %p839_p7 = por %p838_p5, %p837_p3 }
  0x3d   : > { %p833_p0 = pneg %p832_p13 }
  0x3f   : > { %p840_p9 = pnand %p839_p7, %p833_p0 }
  0x41   : > { %843 = shalt.err (!%p840_p9)
}
  0x42   : > { %727 = dma.hbm_to_vmem [thread:$0]  (!%p1065_p10), %s1289_s3, 4096, %s1069_s28, [#allocation9], %s986_s11, %s986_s11, %s987_s12  }
  0x43   : > { %s1119_s9 = sadd.s32 1, %s982_s18   ;;  %s31_s26 = sadd.s32 1, %s978_s17 }
  0x44   : > { %s28_s10 = ssub.s32 %s982_s18, %s1119_s9  ;;  %p38_p12 = scmp.ne.s32.totalorder %s978_s17, %s974_s16 }
  0x45   : > { %p29_p11 = scmp.eq.s32.totalorder %s28_s10, 0  ;;  %p39_p1 = scmp.eq.s32.totalorder %s982_s18, 0 }
  0x46   : > { %p1301_p2 = scmp.eq.s32.totalorder %s1038_s19, 2  ;;  %p741_p6 = scmp.lt.s32.totalorder %s982_s18, 3 }
  0x47   : > { %s1135_s14 = scalar_select %p29_p11, %s978_s17, %s31_s26  }
  0x48   : > { %p1129_p4 = por %p1301_p2, %p38_p12  ;;  %p40_p8 = por %p39_p1, %p38_p12 }
  0x49   : > { %s188_s20 = sand.u32 1, %s978_s17   ;;  %s630_s11 = sshll.u32 %s982_s18, 7 }
  0x4a   : > { %s1302_s13 = scalar_select %p1129_p4, 1, 0 }
  0x4b   : > { %s1138_s28 = sshll.u32 %s188_s20, 3  ;;  %s1144_s27 = scalar_lea.hbm %s1286_s0, %s630_s11 }
  0x4c   : > { %s192_s29 = scalar_lea.vmem [#allocation2], %s1138_s28  ;;  %p1149_p10 = pnand %p741_p6, %p40_p8 }
  0x4d   : > { %s199_s30 = sshll.u32 %s192_s29, 4  ;;  %s1156_s7 = scalar_lea.hbm %s1287_s1, %s630_s11  ;;  %s1147_s30 = int_to_ptr.vmem [resolvable:$true] %s199_s30 }
  0x4e   : > { %s206_s8 = sand.u32 1, %s982_s18   ;;  %s189_s26 = scalar_lea.sflag [#allocation3], %s188_s20 }
  0x4f   : > { %s844_s10 = scalar_lea.hbm %s1144_s27, 128  ;;  %p846_p0 = pneg %p1149_p10 }
  0x50   : > { %p845_p13 = scmp.ne.s32.totalorder %s1144_s27, %s844_s10  ;;  %s849_s29 = scalar_lea.hbm %s1286_s0, 384 }
  0x51   : > { %p850_p7 = scmp.lt.u32.totalorder %s1144_s27, %s1286_s0  ;;  %p851_p9 = scmp.lt.u32.totalorder %s849_s29, %s844_s10 }
  0x52   : > { %p847_p3 = pnand %p846_p0, %p845_p13  ;;  %p853_p11 = scmp.lt.u32.totalorder %s844_s10, %s1144_s27 }
  0x53   : > { %p852_p12 = por %p851_p9, %p850_p7 }
  0x54   : > { %p848_p5 = pneg %p847_p3 }
  0x55   : > { %p854_p1 = por %p853_p11, %p852_p12 }
  0x57   : > { %p855_p2 = pnand %p854_p1, %p848_p5 }
  0x59   : > { %858 = shalt.err (!%p855_p2)
}
  0x5a   : > { %s859_s20 = scalar_lea.vmem %s1147_s30, 128  ;;  %s988_s11 = smov [#allocation2]  }
  0x5b   : > { %p860_p6 = scmp.ne.s32.totalorder %s1147_s30, %s859_s20  ;;  %s864_s25 = sshll.u32 %s988_s11, 4  ;;  %s865_s25 = int_to_ptr.vmem [resolvable:$false] %s864_s25 }
  0x5c   : > { %s866_s2 = scalar_lea.vmem %s865_s25, 256  ;;  %p867_p3 = scmp.lt.s32.totalorder %s1147_s30, %s865_s25 }
  0x5d   : > { %p862_p8 = pnand %p860_p6, %p846_p0  ;;  %p868_p7 = scmp.lt.s32.totalorder %s866_s2, %s859_s20 }
  0x5f   : > { %p863_p13 = pneg %p862_p8  ;;  %p869_p9 = por %p868_p7, %p867_p3 }
  0x61   : > { %p870_p12 = pnand %p869_p9, %p863_p13 }
  0x63   : > { %873 = shalt.err (!%p870_p12)
}
  0x64   : > { %731 = dma.hbm_to_vmem [thread:$0]  (!%p1149_p10), %s1144_s27, 128, %s1147_s30, %s189_s26  }
  0x65   : > { %s210_s10 = scalar_lea.vmem [#allocation5], %s1138_s28  ;;  %s207_s24 = scalar_lea.sflag [#allocation6], %s206_s8 }
  0x66   : > { %s217_s12 = sshll.u32 %s210_s10, 4  ;;  %s874_s29 = scalar_lea.hbm %s1156_s7, 128  ;;  %s218_s12 = int_to_ptr.vmem [resolvable:$true] %s217_s12 }
  0x67   : > { %p875_p5 = scmp.ne.s32.totalorder %s1156_s7, %s874_s29  ;;  %s879_s11 = scalar_lea.hbm %s1287_s1, 384 }
  0x68   : > { %p880_p2 = scmp.lt.u32.totalorder %s1156_s7, %s1287_s1  ;;  %p881_p6 = scmp.lt.u32.totalorder %s879_s11, %s874_s29 }
  0x69   : > { %p877_p11 = pnand %p875_p5, %p846_p0  ;;  %p883_p13 = scmp.lt.u32.totalorder %s874_s29, %s1156_s7 }
  0x6a   : > { %p882_p8 = por %p881_p6, %p880_p2 }
  0x6b   : > { %p878_p1 = pneg %p877_p11 }
  0x6c   : > { %p884_p3 = por %p883_p13, %p882_p8 }
  0x6e   : > { %p885_p7 = pnand %p884_p3, %p878_p1 }
  0x70   : > { %888 = shalt.err (!%p885_p7)
}
  0x71   : > { %s889_s28 = scalar_lea.vmem %s218_s12, 128  ;;  %s989_s27 = smov [#allocation5]  }
  0x72   : > { %p890_p9 = scmp.ne.s32.totalorder %s218_s12, %s889_s28  ;;  %s894_s30 = sshll.u32 %s989_s27, 4  ;;  %s895_s30 = int_to_ptr.vmem [resolvable:$false] %s894_s30 }
  0x73   : > { %s896_s8 = scalar_lea.vmem %s895_s30, 256  ;;  %p897_p11 = scmp.lt.s32.totalorder %s218_s12, %s895_s30 }
  0x74   : > { %p892_p12 = pnand %p890_p9, %p846_p0  ;;  %p898_p4 = scmp.lt.s32.totalorder %s896_s8, %s889_s28 }
  0x76   : > { %p893_p5 = pneg %p892_p12  ;;  %p899_p2 = por %p898_p4, %p897_p11 }
  0x78   : > { %p900_p6 = pnand %p899_p2, %p893_p5 }
  0x7a   : > { %903 = shalt.err (!%p900_p6)
}
  0x7b   : > { %734 = dma.hbm_to_vmem [thread:$0]  (!%p1149_p10), %s1156_s7, 128, %s218_s12, %s207_s24  }
  0x7c   : > { %p1304_p1 = scmp.ne.s32.totalorder %s1298_s23, 0 }
  0x7d   : > { %s1209_s26 = sand.u32 (!%p1304_p1), 1, %s974_s16   ;;  %p1305_p4 = scmp.ne.s32.totalorder (!%p1304_p1), %s1296_s21, 0 }
  0x7e   : > { %226 = sbr.rel (%p1304_p1) target bundleno = 431 (0x1af), region = 36  ;;  %s1212_s10 = sshll.u32 (!%p1304_p1), %s1209_s26, 3 }
  0x7f   : > { %s229_s29 = scalar_lea.sflag (!%p1304_p1), [#allocation3], %s1209_s26  ;;  %s232_s6 = scalar_lea.vmem (!%p1304_p1), [#allocation2], %s1212_s10 }
  0x85   : > { %949 = dma.done.wait (%p1305_p4), %s229_s29, 128  }
  0x86   : > { %951 = vsyncadd (%p1305_p4), %s229_s29, 4294967168  ;;  %s237_s23 = sand.u32 1, %s1038_s19   ;;  %s241_s7 = scalar_lea.vmem [#allocation5], %s1212_s10 }
  0x87   : > { %s238_s5 = scalar_lea.sflag [#allocation6], %s237_s23 }
  0x88   : > { %953 = dma.done.wait (%p1305_p4), %s238_s5, 128  }
  0x89   : > { %955 = vsyncadd (%p1305_p4), %s238_s5, 4294967168  ;;  %p1306_p10 = scmp.eq.s32.totalorder %s1038_s19, 0 }
  0x8b   : > { %957 = dma.done.wait (%p1306_p10), [#allocation6], 4096   ;;  %p1307_p0 = pmov %p1306_p10 }
  0x8d   : > { %959 = vsyncadd (%p1307_p0), [#allocation6], 4294963200  ;;  %p1308_p8 = pmov %p1307_p0 }
  0x8e   : > { %p1309_p13 = pmov %p1307_p0 }
  0x8f   : > { %961 = dma.done.wait (%p1308_p8), [#allocation9], 4096  }
  0x90   : > { %963 = vsyncadd (%p1309_p13), [#allocation9], 4294963200  ;;  %v990_v0 = vmov 0.0   ;;  %v282_v1 = vld [vmem:[#allocation7 + $0x8] sm:$0xff]  ;;  %v284_v2 = vld [vmem:[#allocation7 + $0x18] sm:$0xff]  ;;  %s640_s21 = sshll.u32 %s1038_s19, 7 }
  0x91   : > { %377 = vmatprep.mubr.f32.mxu0 %v990_v0  ;;  %480 = vmatprep.mubr.f32.mxu1 %v990_v0  ;;  %v385_v3 = vld [vmem:[#allocation8 + $0x8] sm:$0xff]  ;;  %v643_v4 = vpack.c.bf16 %v284_v2, %v282_v1  ;;  %v387_v5 = vld [vmem:[#allocation8 + $0x18] sm:$0xff]  ;;  %v281_v6 = vld [vmem:[#allocation7] sm:$0xff]  ;;  %s278_s12 = scalar_lea.vmem [#allocation10], %s1212_s10  ;;  %s1243_s25 = scalar_lea.hbm %s1290_s4, %s640_s21 }
  0x92   : > { %v283_v7 = vld [vmem:[#allocation7 + $0x10] sm:$0xff]  ;;  %v675_v8 = vpack.c.bf16 %v387_v5, %v385_v3  ;;  %v384_v10 = vld [vmem:[#allocation8] sm:$0xff]  ;;  %v286_v12 = vld [vmem:[#allocation7 + $0x28] sm:$0xff]  ;;  %s512_s24 = sshll.u32 %s278_s12, 4  ;;  %s499_s2 = scalar_lea.sflag [#allocation4], %s1209_s26  ;;  %s1245_s24 = int_to_ptr.vmem [resolvable:$true] %s512_s24 }
  0x93   : > { %v645_v9 = vpack.c.bf16 %v283_v7, %v281_v6  ;;  %v386_v11 = vld [vmem:[#allocation8 + $0x10] sm:$0xff]  ;;  %644 = vmatprep.subr.bf16.mxu0 %v643_v4  ;;  %v288_v14 = vld [vmem:[#allocation7 + $0x38] sm:$0xff]  ;;  %v389_v15 = vld [vmem:[#allocation8 + $0x28] sm:$0xff]  ;;  %s904_s28 = scalar_lea.vmem %s1245_s24, 128  ;;  %p1310_p7 = scmp.ne.s32.totalorder %s1302_s13, 0 }
  0x94   : > { %v677_v13 = vpack.c.bf16 %v386_v11, %v384_v10  ;;  %v391_v16 = vld [vmem:[#allocation8 + $0x38] sm:$0xff]  ;;  %676 = vmatprep.subr.bf16.mxu1 %v675_v8  ;;  %v647_v17 = vpack.c.bf16 %v288_v14, %v286_v12  ;;  %v285_v19 = vld [vmem:[#allocation7 + $0x20] sm:$0xff]  ;;  %v287_v20 = vld [vmem:[#allocation7 + $0x30] sm:$0xff]  ;;  %p905_p3 = scmp.ne.s32.totalorder %s1245_s24, %s904_s28  ;;  %s991_s19 = smov [#allocation10]  }
  0x95   : > { %646 = vmatpush1.bf16.msra.mxu0 %v645_v9  ;;  %v679_v18 = vpack.c.bf16 %v391_v16, %v389_v15  ;;  %v388_v21 = vld [vmem:[#allocation8 + $0x20] sm:$0xff]  ;;  %v649_v22 = vpack.c.bf16 %v287_v20, %v285_v19  ;;  %v390_v23 = vld [vmem:[#allocation8 + $0x30] sm:$0xff]  ;;  %v290_v24 = vld [vmem:[#allocation7 + $0x48] sm:$0xff]  ;;  %s908_s27 = sshll.u32 %s991_s19, 4  ;;  %s909_s27 = int_to_ptr.vmem [resolvable:$false] %s908_s27 }
  0x96   : > { %678 = vmatpush1.bf16.msra.mxu1 %v677_v13  ;;  %v292_v25 = vld [vmem:[#allocation7 + $0x58] sm:$0xff]  ;;  %648 = vmatprep.subr.bf16.mxu0 %v647_v17  ;;  %v681_v26 = vpack.c.bf16 %v390_v23, %v388_v21  ;;  %v393_v28 = vld [vmem:[#allocation8 + $0x48] sm:$0xff]  ;;  %v289_v30 = vld [vmem:[#allocation7 + $0x40] sm:$0xff]  ;;  %p906_p9 = pnand %p905_p3, %p1310_p7  ;;  %s910_s30 = scalar_lea.vmem %s909_s27, 256 }
  0x97   : > { %680 = vmatprep.subr.bf16.mxu1 %v679_v18  ;;  %v651_v27 = vpack.c.bf16 %v292_v25, %v290_v24  ;;  %v395_v29 = vld [vmem:[#allocation8 + $0x58] sm:$0xff]  ;;  %v291_v32 = vld [vmem:[#allocation7 + $0x50] sm:$0xff]  ;;  %v392_v33 = vld [vmem:[#allocation8 + $0x40] sm:$0xff]  ;;  %p911_p5 = scmp.lt.s32.totalorder %s1245_s24, %s909_s27  ;;  %p912_p11 = scmp.lt.s32.totalorder %s910_s30, %s904_s28 }
  0x98   : > { %v683_v31 = vpack.c.bf16 %v395_v29, %v393_v28  ;;  %v394_v34 = vld [vmem:[#allocation8 + $0x50] sm:$0xff]  ;;  %v653_v35 = vpack.c.bf16 %v291_v32, %v289_v30  ;;  %v294_v36 = vld [vmem:[#allocation7 + $0x68] sm:$0xff]  ;;  %v296_v37 = vld [vmem:[#allocation7 + $0x78] sm:$0xff]  ;;  %p907_p12 = pneg %p906_p9 }
  0x99   : > { %650 = vmatpush1.bf16.msra.mxu0 %v649_v22  ;;  %v397_v38 = vld [vmem:[#allocation8 + $0x68] sm:$0xff]  ;;  %v685_v39 = vpack.c.bf16 %v394_v34, %v392_v33  ;;  %v655_v40 = vpack.c.bf16 %v296_v37, %v294_v36  ;;  %v399_v41 = vld [vmem:[#allocation8 + $0x78] sm:$0xff]  ;;  %v293_v42 = vld [vmem:[#allocation7 + $0x60] sm:$0xff]  ;;  %p913_p2 = por %p912_p11, %p911_p5 }
  0x9a   : > { %682 = vmatpush1.bf16.msra.mxu1 %v681_v26  ;;  %652 = vmatprep.subr.bf16.mxu0 %v651_v27  ;;  %v295_v43 = vld [vmem:[#allocation7 + $0x70] sm:$0xff]  ;;  %v687_v44 = vpack.c.bf16 %v399_v41, %v397_v38  ;;  %v396_v45 = vld [vmem:[#allocation8 + $0x60] sm:$0xff]  ;;  %v298_v47 = vld [vmem:[#allocation7 + $0x88] sm:$0xff] }
  0x9b   : > { %684 = vmatprep.subr.bf16.mxu1 %v683_v31  ;;  %v398_v46 = vld [vmem:[#allocation8 + $0x70] sm:$0xff]  ;;  %v300_v48 = vld [vmem:[#allocation7 + $0x98] sm:$0xff]  ;;  %v401_v49 = vld [vmem:[#allocation8 + $0x88] sm:$0xff]  ;;  %v657_v51 = vpack.c.bf16 %v295_v43, %v293_v42  ;;  %p914_p6 = pnand %p913_p2, %p907_p12 }
  0x9c   : > { %v403_v50 = vld [vmem:[#allocation8 + $0x98] sm:$0xff]  ;;  %v689_v52 = vpack.c.bf16 %v398_v46, %v396_v45  ;;  %v659_v53 = vpack.c.bf16 %v300_v48, %v298_v47  ;;  %v297_v54 = vld [vmem:[#allocation7 + $0x80] sm:$0xff]  ;;  %v299_v55 = vld [vmem:[#allocation7 + $0x90] sm:$0xff] }
  0x9d   : > { %654 = vmatpush1.bf16.msra.mxu0 %v653_v35  ;;  %v400_v56 = vld [vmem:[#allocation8 + $0x80] sm:$0xff]  ;;  %v691_v57 = vpack.c.bf16 %v403_v50, %v401_v49  ;;  %v402_v58 = vld [vmem:[#allocation8 + $0x90] sm:$0xff]  ;;  %v302_v59 = vld [vmem:[#allocation7 + $0xa8] sm:$0xff]  ;;  %v661_v63 = vpack.c.bf16 %v299_v55, %v297_v54 }
  0x9e   : > { %686 = vmatpush1.bf16.msra.mxu1 %v685_v39  ;;  %656 = vmatprep.subr.bf16.mxu0 %v655_v40  ;;  %v304_v60 = vld [vmem:[#allocation7 + $0xb8] sm:$0xff]  ;;  %v405_v61 = vld [vmem:[#allocation8 + $0xa8] sm:$0xff]  ;;  %v693_v0 = vpack.c.bf16 %v402_v58, %v400_v56  ;;  %v301_v2 = vld [vmem:[#allocation7 + $0xa0] sm:$0xff] }
  0x9f   : > { %688 = vmatprep.subr.bf16.mxu1 %v687_v44  ;;  %v407_v62 = vld [vmem:[#allocation8 + $0xb8] sm:$0xff]  ;;  %v663_v1 = vpack.c.bf16 %v304_v60, %v302_v59  ;;  %v303_v3 = vld [vmem:[#allocation7 + $0xb0] sm:$0xff]  ;;  %v404_v4 = vld [vmem:[#allocation8 + $0xa0] sm:$0xff] }
  0xa0   : > { %v695_v5 = vpack.c.bf16 %v407_v62, %v405_v61  ;;  %v406_v6 = vld [vmem:[#allocation8 + $0xb0] sm:$0xff]  ;;  %v306_v7 = vld [vmem:[#allocation7 + $0xc8] sm:$0xff]  ;;  %v308_v8 = vld [vmem:[#allocation7 + $0xd8] sm:$0xff]  ;;  %v665_v11 = vpack.c.bf16 %v303_v3, %v301_v2 }
  0xa1   : > { %658 = vmatpush1.bf16.msra.mxu0 %v657_v51  ;;  %v409_v9 = vld [vmem:[#allocation8 + $0xc8] sm:$0xff]  ;;  %v411_v10 = vld [vmem:[#allocation8 + $0xd8] sm:$0xff]  ;;  %v697_v12 = vpack.c.bf16 %v406_v6, %v404_v4  ;;  %v667_v13 = vpack.c.bf16 %v308_v8, %v306_v7  ;;  %v305_v14 = vld [vmem:[#allocation7 + $0xc0] sm:$0xff] }
  0xa2   : > { %690 = vmatpush1.bf16.msra.mxu1 %v689_v52  ;;  %660 = vmatprep.subr.bf16.mxu0 %v659_v53  ;;  %v307_v15 = vld [vmem:[#allocation7 + $0xd0] sm:$0xff]  ;;  %v408_v16 = vld [vmem:[#allocation8 + $0xc0] sm:$0xff]  ;;  %v699_v17 = vpack.c.bf16 %v411_v10, %v409_v9  ;;  %v310_v19 = vld [vmem:[#allocation7 + $0xe8] sm:$0xff] }
  0xa3   : > { %692 = vmatprep.subr.bf16.mxu1 %v691_v57  ;;  %v410_v18 = vld [vmem:[#allocation8 + $0xd0] sm:$0xff]  ;;  %v312_v20 = vld [vmem:[#allocation7 + $0xf8] sm:$0xff]  ;;  %v413_v21 = vld [vmem:[#allocation8 + $0xe8] sm:$0xff]  ;;  %v669_v23 = vpack.c.bf16 %v307_v15, %v305_v14 }
  0xa4   : > { %v415_v22 = vld [vmem:[#allocation8 + $0xf8] sm:$0xff]  ;;  %v701_v24 = vpack.c.bf16 %v410_v18, %v408_v16  ;;  %v671_v25 = vpack.c.bf16 %v312_v20, %v310_v19  ;;  %v309_v26 = vld [vmem:[#allocation7 + $0xe0] sm:$0xff]  ;;  %v311_v27 = vld [vmem:[#allocation7 + $0xf0] sm:$0xff] }
  0xa5   : > { %662 = vmatpush1.bf16.msra.mxu0 %v661_v63  ;;  %v703_v28 = vpack.c.bf16 %v415_v22, %v413_v21  ;;  %v412_v29 = vld [vmem:[#allocation8 + $0xe0] sm:$0xff]  ;;  %v414_v30 = vld [vmem:[#allocation8 + $0xf0] sm:$0xff]  ;;  %v673_v31 = vpack.c.bf16 %v311_v27, %v309_v26 }
  0xa6   : > { %694 = vmatpush1.bf16.msra.mxu1 %v693_v0  ;;  %664 = vmatprep.subr.bf16.mxu0 %v663_v1  ;;  %v705_v32 = vpack.c.bf16 %v414_v30, %v412_v29  ;;  %v279_v33 = vld [vmem:[%s232_s6] sm:$0xff]  ;;  %v280_v34 = vld [vmem:[%s241_s7] sm:$0xff] }
  0xa7   : > { %696 = vmatprep.subr.bf16.mxu1 %v695_v5 }
  0xa9   : > { %666 = vmatpush1.bf16.msra.mxu0 %v665_v11 }
  0xaa   : > { %698 = vmatpush1.bf16.msra.mxu1 %v697_v12  ;;  %668 = vmatprep.subr.bf16.mxu0 %v667_v13 }
  0xab   : > { %700 = vmatprep.subr.bf16.mxu1 %v699_v17 }
  0xad   : > { %670 = vmatpush1.bf16.msra.mxu0 %v669_v23 }
  0xae   : > { %702 = vmatpush1.bf16.msra.mxu1 %v701_v24  ;;  %672 = vmatprep.subr.bf16.mxu0 %v671_v25 }
  0xaf   : > { %704 = vmatprep.subr.bf16.mxu1 %v703_v28 }
  0xb1   : > { %674 = vmatpush1.bf16.msra.mxu0 %v673_v31 }
  0xb2   : > { %706 = vmatpush1.bf16.msra.mxu1 %v705_v32 }
  0xb4   : > { %378 = vmatmul.mubr.f32.vlgmr.msra.gmra.mrb[0].mxu0 %v279_v33 }
  0xb5   : > { %481 = vmatmul.mubr.f32.vlgmr.msra.gmra.mrb[0].mxu1 %v280_v34 }
 0x187   : > { %v379_v35 = vpop.f32.mrb[0].mxu0 }
 0x188   : > { %782 = vtanh.f32 %v379_v35  ;;  %v482_v36 = vpop.f32.mrb[0].mxu1  ;;  %v381_v37 = vpop.f32.mrb[1].mxu0 }
 0x189   : > { %784 = vtanh.f32 %v482_v36  ;;  %v484_v38 = vpop.f32.mrb[1].mxu1 }
 0x18a   : > { %v489_v39 = vadd.f32 %v484_v38, %v381_v37 }
 0x18c   : > { %v490_v40 = vmul.f32 0.5, %v489_v39 }
 0x18e   : > { %786 = vtanh.f32 %v490_v40 }
 0x192   : > { %v783_v41 = vpop.eup %782 }
 0x193   : > { %v785_v42 = vpop.eup %784 }
 0x194   : > { %v494_v43 = vsub.f32 %v783_v41, %v785_v42 }
 0x198   : > { %v787_v44 = vpop.eup %786 }
 0x199   : > { %v492_v45 = vadd.f32 1.0, %v787_v44 }
 0x19b   : > { %v493_v46 = vmul.f32 0.5, %v492_v45 }
 0x19d   : > { %v495_v47 = vmul.f32 %v494_v43, %v493_v46 }
 0x19f   : > { %v496_v48 = vadd.f32 %v785_v42, %v495_v47 }
 0x1a1   : > { %497 = vst [vmem:[%s278_s12] sm:$0xff] %v496_v48 }
 0x1a2   : > { %917 = shalt.err (!%p914_p6)
}
 0x1a3   : > { %s918_s8 = scalar_lea.hbm %s1243_s25, 128  ;;  %s922_s29 = scalar_lea.hbm %s1290_s4, 384 }
 0x1a4   : > { %p919_p1 = scmp.ne.s32.totalorder %s1243_s25, %s918_s8  ;;  %p923_p0 = scmp.lt.u32.totalorder %s1243_s25, %s1290_s4 }
 0x1a5   : > { %p924_p8 = scmp.lt.u32.totalorder %s922_s29, %s918_s8  ;;  %p926_p3 = scmp.lt.u32.totalorder %s918_s8, %s1243_s25 }
 0x1a6   : > { %p920_p4 = pnand %p919_p1, %p1310_p7 }
 0x1a7   : > { %p925_p13 = por %p924_p8, %p923_p0 }
 0x1a8   : > { %p921_p10 = pneg %p920_p4 }
 0x1a9   : > { %p927_p9 = por %p926_p3, %p925_p13 }
 0x1ab   : > { %p928_p12 = pnand %p927_p9, %p921_p10 }
 0x1ad   : > { %931 = shalt.err (!%p928_p12)
}
 0x1ae   : > { %719 = dma.vmem_to_hbm [thread:$0]  (%p1310_p7), %s1245_s24, 128, %s1243_s25, %s499_s2  }
 0x1af PF: > { %p744_p5 = scmp.ge.s32.totalorder %s982_s18, 2  ;;  %s524_s5 = sand.u32 1, %s970_s15  }
 0x1b0   : > { %p1311_p11 = scmp.ne.s32.totalorder %s1297_s22, 0  ;;  %s525_s7 = scalar_lea.sflag [#allocation4], %s524_s5 }
 0x1b2   : > { %p736_p2 = pnand %p744_p5, %p1311_p11 }
 0x1b4   : > { %965 = dma.done.wait (!%p736_p2), %s525_s7, 128  }
 0x1b5   : > { %967 = vsyncadd (!%p736_p2), %s525_s7, 4294967168  ;;  %p21_p6 = scmp.ge.s32.totalorder %s1119_s9, 5   ;;  %s1312_s15 = smov %s974_s16 }
 0x1b6   : > { %s1313_s16 = smov %s978_s17  ;;  %s1314_s17 = smov %s1135_s14 }
 0x1b7   : > { %s1315_s18 = smov %s1119_s9  ;;  %23 = sbr.rel (!%p21_p6) target bundleno = 10 (0xa), region = 102 }
 0x1be   :  { %530 = vsyncpa [#allocation3], 1 }
 0x1bf   :  { %532 = vsyncpa [#allocation3 + $0x1], 1 }
 0x1c0   :  { %533 = vsyncpa [#allocation6], 1 }
 0x1c1   :  { %535 = vsyncpa [#allocation6 + $0x1], 1 }
 0x1c2   :  { %536 = vsyncpa [#allocation9], 1 }
 0x1c3   :  { %537 = vsyncpa [#allocation4], 1 }
 0x1c4   :  { %539 = vsyncpa [#allocation4 + $0x1], 1 }

</bundles_post_ra>
